<compile_context>
chip_gen: v7x
topology: tpu7x:2x2x1
jax: 0.10.0
libtpu: 0.0.40
codegen_flags: <defaults>
</compile_context>

<pallas_src>
import jax
import jax.numpy as jnp
from jax.experimental import pallas as pl
from jax.experimental.pallas import tpu as pltpu


def _make_slice_kernel(num_channels):
    def _slice_kernel(x_ref, *o_refs):
        # x_ref:      (TB, C, H*W)  — one batch tile, all channels, lane-dense.
        # o_refs[c]:  (TB, 1, H*W)  — channel c of that batch tile.
        for c in range(num_channels):
            o_refs[c][...] = x_ref[:, c:c + 1, :]
    return _slice_kernel


def slice_layer(x, *, block_b=None):
    """Pallas equivalent of SliceLayer.forward.

    Args:
      x: (B, C, H, W) array (NCHW, matching PyTorch).
      block_b: optional batch-tile size. Defaults to the largest tile whose
        input block is <= ~2 MiB (keeps double-buffered VMEM usage small on
        all of v5e / v6e / v7x).
    Returns:
      list of C arrays, each of shape (B, 1, H, W), same dtype as x.
    """
    B, C, H, W = x.shape
    HW = H * W

    # Contiguous reshape -> lane-dense trailing dim (bitcast-level cost).
    x2 = x.reshape(B, C, HW)

    if block_b is None:
        bytes_per_batch_row = C * HW * jnp.dtype(x.dtype).itemsize
        # Cap the input block at ~2 MiB; with double buffering and the C output
        # blocks (which together equal the input block size) this stays well
        # under the scoped-VMEM default on every TPU generation.
        block_b = max(1, min(B, (2 * 1024 * 1024) // max(1, bytes_per_batch_row)))

    grid = (pl.cdiv(B, block_b),)

    outs = pl.pallas_call(
        _make_slice_kernel(C),
        out_shape=tuple(
            jax.ShapeDtypeStruct((B, 1, HW), x.dtype) for _ in range(C)
        ),
        grid=grid,
        in_specs=[
            # One batch tile, all channels. Last two block dims (C, HW) equal
            # the full array dim / are a multiple of 128 -> valid & lane-dense.
            pl.BlockSpec((block_b, C, HW), lambda b: (b, 0, 0)),
        ],
        out_specs=tuple(
            pl.BlockSpec((block_b, 1, HW), lambda b: (b, 0, 0))
            for _ in range(C)
        ),
        compiler_params=pltpu.CompilerParams(
            # Batch tiles are independent -> shard across v7x's two TCs.
            dimension_semantics=("parallel",),
        ),
    )(x2)

    # Glue: contiguous trailing-dim split back to (B, 1, H, W); the Python list
    # is the module's return contract.
    return [o.reshape(B, 1, H, W) for o in outs]


if __name__ == "__main__":
    key = jax.random.PRNGKey(0)
    B, C, H, W = 2, 4, 16, 16
    x = jax.random.normal(key, (B, C, H, W), dtype=jnp.float32)

    out_list = slice_layer(x)
    out_list = [jax.block_until_ready(o) for o in out_list]

    # Correctness check vs. pure-JAX reference of the PyTorch semantics.
    assert len(out_list) == C
    for idx in range(C):
        ref = x[:, idx, :, :][:, None, :, :]          # unsqueeze(1)
        assert out_list[idx].shape == (B, 1, H, W)
        assert out_list[idx].dtype == x.dtype
        assert jnp.array_equal(out_list[idx], ref)

    print("KERNEL_OK")
</pallas_src>

<mosaic_0001>
module attributes {stable_mosaic.version = 11 : i64} {
  func.func @_slice_kernel(%arg0: i32, %arg1: memref<2x4x256xf32, #tpu.memory_space<vmem>>, %arg2: memref<2x1x256xf32, #tpu.memory_space<vmem>>, %arg3: memref<2x1x256xf32, #tpu.memory_space<vmem>>, %arg4: memref<2x1x256xf32, #tpu.memory_space<vmem>>, %arg5: memref<2x1x256xf32, #tpu.memory_space<vmem>>) attributes {dimension_semantics = [#tpu.dimension_semantics<parallel>], iteration_bounds = array<i64: 1>, scalar_prefetch = 0 : i64, scratch_operands = 0 : i64, tpu.core_type = #tpu.core_type<tc>, window_params = [{transform_indices = @transform_0, window_bounds = array<i64: 2, 4, 256>}, {transform_indices = @transform_1, window_bounds = array<i64: 2, 1, 256>}, {transform_indices = @transform_2, window_bounds = array<i64: 2, 1, 256>}, {transform_indices = @transform_3, window_bounds = array<i64: 2, 1, 256>}, {transform_indices = @transform_4, window_bounds = array<i64: 2, 1, 256>}]} {
    %c0 = arith.constant 0 : index
    %c0_0 = arith.constant 0 : index
    %c0_1 = arith.constant 0 : index
    %0 = vector.load %arg1[%c0, %c0_0, %c0_1] : memref<2x4x256xf32, #tpu.memory_space<vmem>>, vector<2x1x256xf32>
    %c0_2 = arith.constant 0 : index
    %c0_3 = arith.constant 0 : index
    %c0_4 = arith.constant 0 : index
    %1 = vector.load %arg2[%c0_2, %c0_3, %c0_4] : memref<2x1x256xf32, #tpu.memory_space<vmem>>, vector<2x1x256xf32>
    tpu.vector_store %arg2[%c0_2, %c0_3, %c0_4], %0 {strides = array<i32>} : memref<2x1x256xf32, #tpu.memory_space<vmem>>, vector<2x1x256xf32>,
    %c0_5 = arith.constant 0 : index
    %c1 = arith.constant 1 : index
    %c0_6 = arith.constant 0 : index
    %2 = vector.load %arg1[%c0_5, %c1, %c0_6] : memref<2x4x256xf32, #tpu.memory_space<vmem>>, vector<2x1x256xf32>
    %c0_7 = arith.constant 0 : index
    %c0_8 = arith.constant 0 : index
    %c0_9 = arith.constant 0 : index
    %3 = vector.load %arg3[%c0_7, %c0_8, %c0_9] : memref<2x1x256xf32, #tpu.memory_space<vmem>>, vector<2x1x256xf32>
    tpu.vector_store %arg3[%c0_7, %c0_8, %c0_9], %2 {strides = array<i32>} : memref<2x1x256xf32, #tpu.memory_space<vmem>>, vector<2x1x256xf32>,
    %c0_10 = arith.constant 0 : index
    %c2 = arith.constant 2 : index
    %c0_11 = arith.constant 0 : index
    %4 = vector.load %arg1[%c0_10, %c2, %c0_11] : memref<2x4x256xf32, #tpu.memory_space<vmem>>, vector<2x1x256xf32>
    %c0_12 = arith.constant 0 : index
    %c0_13 = arith.constant 0 : index
    %c0_14 = arith.constant 0 : index
    %5 = vector.load %arg4[%c0_12, %c0_13, %c0_14] : memref<2x1x256xf32, #tpu.memory_space<vmem>>, vector<2x1x256xf32>
    tpu.vector_store %arg4[%c0_12, %c0_13, %c0_14], %4 {strides = array<i32>} : memref<2x1x256xf32, #tpu.memory_space<vmem>>, vector<2x1x256xf32>,
    %c0_15 = arith.constant 0 : index
    %c3 = arith.constant 3 : index
    %c0_16 = arith.constant 0 : index
    %6 = vector.load %arg1[%c0_15, %c3, %c0_16] : memref<2x4x256xf32, #tpu.memory_space<vmem>>, vector<2x1x256xf32>
    %c0_17 = arith.constant 0 : index
    %c0_18 = arith.constant 0 : index
    %c0_19 = arith.constant 0 : index
    %7 = vector.load %arg5[%c0_17, %c0_18, %c0_19] : memref<2x1x256xf32, #tpu.memory_space<vmem>>, vector<2x1x256xf32>
    tpu.vector_store %arg5[%c0_17, %c0_18, %c0_19], %6 {strides = array<i32>} : memref<2x1x256xf32, #tpu.memory_space<vmem>>, vector<2x1x256xf32>,
    return
  }
  func.func @transform_0(%arg0: i32) -> (i32, i32, i32) {
    %c0_i32 = arith.constant 0 : i32
    %c0_i32_0 = arith.constant 0 : i32
    %c0_i32_1 = arith.constant 0 : i32
    return %arg0, %c0_i32, %c0_i32_0 : i32, i32, i32
  }
  func.func @transform_1(%arg0: i32) -> (i32, i32, i32) {
    %c0_i32 = arith.constant 0 : i32
    %c0_i32_0 = arith.constant 0 : i32
    %c0_i32_1 = arith.constant 0 : i32
    return %arg0, %c0_i32, %c0_i32_0 : i32, i32, i32
  }
  func.func @transform_2(%arg0: i32) -> (i32, i32, i32) {
    %c0_i32 = arith.constant 0 : i32
    %c0_i32_0 = arith.constant 0 : i32
    %c0_i32_1 = arith.constant 0 : i32
    return %arg0, %c0_i32, %c0_i32_0 : i32, i32, i32
  }
  func.func @transform_3(%arg0: i32) -> (i32, i32, i32) {
    %c0_i32 = arith.constant 0 : i32
    %c0_i32_0 = arith.constant 0 : i32
    %c0_i32_1 = arith.constant 0 : i32
    return %arg0, %c0_i32, %c0_i32_0 : i32, i32, i32
  }
  func.func @transform_4(%arg0: i32) -> (i32, i32, i32) {
    %c0_i32 = arith.constant 0 : i32
    %c0_i32_0 = arith.constant 0 : i32
    %c0_i32_1 = arith.constant 0 : i32
    return %arg0, %c0_i32, %c0_i32_0 : i32, i32, i32
  }
}

</mosaic_0001>

<bundles_post_ra>
// kernel: tpu_custom_call.1
= control target key start
LH: loop header
LB: loop body
LE: loop exit
PB: predicated region body
PF: predicated region fallthrough
CT: control target
= control target key end

     0   :  { %10 = vsyncpa [#allocation3], 0  ;;  %s401_s0 = inlined_call_operand.hbm [shape: f32[2,4,256], index: 0, kind: input, shape index: {}]   ;;  %s402_s1 = inlined_call_operand.hbm [shape: f32[2,1,256], index: 1, kind: output, shape index: {0}]   ;;  %s403_s2 = inlined_call_operand.hbm [shape: f32[2,1,256], index: 2, kind: output, shape index: {1}]   ;;  %s404_s3 = inlined_call_operand.hbm [shape: f32[2,1,256], index: 3, kind: output, shape index: {2}]   ;;  %s405_s4 = inlined_call_operand.hbm [shape: f32[2,1,256], index: 4, kind: output, shape index: {3}]  }
   0x1   :  { %11 = vsyncpa [#allocation4], 0 }
   0x2   :  { %12 = vsyncpa [#allocation7], 0 }
   0x3   :  { %13 = vsyncpa [#allocation10], 0  ;;  %s247_s15 = smov [#allocation2]   ;;  %s129_s19 = scalar_lea.hbm %s401_s0, 256 }
   0x4   :  { %s19_s16 = sshll.u32 %s247_s15, 4  ;;  %p130_p0 = scmp.ne.s32.totalorder %s401_s0, %s129_s19  ;;  %s20_s16 = int_to_ptr.vmem [resolvable:$true] %s19_s16 }
   0x5   :  { %p133_p1 = scmp.lt.u32.totalorder %s129_s19, %s401_s0 }
   0x7   :  { %p135_p2 = pnand %p133_p1, %p130_p0 }
   0x9   :  { %138 = shalt.err (!%p135_p2)
}
   0xa   :  { %s139_s24 = scalar_lea.vmem %s20_s16, 256  ;;  %p144_p4 = scmp.lt.s32.totalorder %s20_s16, %s20_s16 }
   0xb   :  { %p140_p3 = scmp.ne.s32.totalorder %s20_s16, %s139_s24  ;;  %p145_p5 = scmp.lt.s32.totalorder %s139_s24, %s139_s24 }
   0xd   :  { %p146_p6 = por %p145_p5, %p144_p4 }
   0xf   :  { %p147_p7 = pnand %p146_p6, %p140_p3 }
  0x11   :  { %150 = shalt.err (!%p147_p7)
}
  0x12   :  { %s248_s25 = smov 128   ;;  %s249_s26 = smov 8  }
  0x13   :  { %25 = dma.hbm_to_vmem [thread:$0]  %s401_s0, 256, %s20_s16, [#allocation3], %s248_s25, %s248_s25, %s249_s26  }
  0x14   :  { %239 = dma.done.wait [#allocation3], 256  }
  0x15   :  { %240 = vsyncadd [#allocation3], 4294967040  ;;  %v32_v0 = vlaneseq  ;;  %s250_s29 = smov [#allocation6]   ;;  %s251_s5 = smov [#allocation5]  }
  0x16   :  { %s73_s30 = sshll.u32 %s250_s29, 4  ;;  %s61_s6 = sshll.u32 %s251_s5, 4  ;;  %v39_v2 = vld [vmem:[#allocation2 + $0x1] ss:$4 sm:$0x3]  ;;  %s301_s30 = int_to_ptr.vmem [resolvable:$true] %s73_s30  ;;  %s307_s6 = int_to_ptr.vmem [resolvable:$true] %s61_s6 }
  0x17   :  { %vm293_vm0 = vcmp.lt.s32.totalorder %v32_v0, 256  ;;  %s252_s7 = smov [#allocation8]   ;;  %s253_s9 = smov [#allocation9]   ;;  %v41_v3 = vld [vmem:[#allocation2 + $0x9] ss:$4 sm:$0x3] }
  0x18   :  { %s85_s8 = sshll.u32 %s252_s7, 4  ;;  %s97_s10 = sshll.u32 %s253_s9, 4  ;;  %42 = vst.msk [vmem:[#allocation6] sm:$0x3] %vm293_vm0, %v39_v2  ;;  %43 = vst.msk [vmem:[#allocation6 + $0x2] sm:$0x3] %vm293_vm0, %v41_v3  ;;  %s313_s8 = int_to_ptr.vmem [resolvable:$true] %s85_s8  ;;  %s315_s10 = int_to_ptr.vmem [resolvable:$true] %s97_s10 }
  0x19   :  { %v29_v4 = vld [vmem:[#allocation2] ss:$4 sm:$0x3]  ;;  %v31_v5 = vld [vmem:[#allocation2 + $0x8] ss:$4 sm:$0x3]  ;;  %p156_p9 = scmp.lt.s32.totalorder %s301_s30, %s301_s30 }
  0x1a   :  { %36 = vst.msk [vmem:[#allocation5] sm:$0x3] %vm293_vm0, %v29_v4  ;;  %37 = vst.msk [vmem:[#allocation5 + $0x2] sm:$0x3] %vm293_vm0, %v31_v5  ;;  %s151_s0 = scalar_lea.vmem %s301_s30, 64 }
  0x1b   :  { %v45_v6 = vld [vmem:[#allocation2 + $0x2] ss:$4 sm:$0x3]  ;;  %v47_v7 = vld [vmem:[#allocation2 + $0xa] ss:$4 sm:$0x3]  ;;  %p152_p8 = scmp.ne.s32.totalorder %s301_s30, %s151_s0  ;;  %p157_p10 = scmp.lt.s32.totalorder %s151_s0, %s151_s0 }
  0x1c   :  { %48 = vst.msk [vmem:[#allocation8] sm:$0x3] %vm293_vm0, %v45_v6  ;;  %49 = vst.msk [vmem:[#allocation8 + $0x2] sm:$0x3] %vm293_vm0, %v47_v7 }
  0x1d   :  { %v51_v8 = vld [vmem:[#allocation2 + $0x3] ss:$4 sm:$0x3]  ;;  %v53_v9 = vld [vmem:[#allocation2 + $0xb] ss:$4 sm:$0x3]  ;;  %p158_p11 = por %p157_p10, %p156_p9 }
  0x1e   :  { %54 = vst.msk [vmem:[#allocation9] sm:$0x3] %vm293_vm0, %v51_v8  ;;  %55 = vst.msk [vmem:[#allocation9 + $0x2] sm:$0x3] %vm293_vm0, %v53_v9 }
  0x1f   :  { %p159_p12 = pnand %p158_p11, %p152_p8 }
  0x21   :  { %162 = shalt.err (!%p159_p12)
}
  0x22   :  { %s163_s13 = scalar_lea.hbm %s403_s2, 64 }
  0x23   :  { %p164_p13 = scmp.ne.s32.totalorder %s403_s2, %s163_s13  ;;  %p167_p0 = scmp.lt.u32.totalorder %s163_s13, %s403_s2 }
  0x25   :  { %p169_p1 = pnand %p167_p0, %p164_p13 }
  0x27   :  { %172 = shalt.err (!%p169_p1)
}
  0x28   :  { %s254_s18 = smov 32   ;;  %s255_s19 = smov 2  }
  0x29   :  { %79 = dma.vmem_to_hbm [thread:$0]  %s301_s30, 64, %s403_s2, [#allocation7], %s254_s18, %s254_s18, %s255_s19  }
  0x2a   :  { %s173_s22 = scalar_lea.vmem %s307_s6, 64  ;;  %p178_p3 = scmp.lt.s32.totalorder %s307_s6, %s307_s6 }
  0x2b   :  { %p174_p2 = scmp.ne.s32.totalorder %s307_s6, %s173_s22  ;;  %p179_p4 = scmp.lt.s32.totalorder %s173_s22, %s173_s22 }
  0x2d   :  { %p180_p5 = por %p179_p4, %p178_p3 }
  0x2f   :  { %p181_p6 = pnand %p180_p5, %p174_p2 }
  0x31   :  { %184 = shalt.err (!%p181_p6)
}
  0x32   :  { %s185_s25 = scalar_lea.hbm %s402_s1, 64 }
  0x33   :  { %p186_p7 = scmp.ne.s32.totalorder %s402_s1, %s185_s25  ;;  %p189_p8 = scmp.lt.u32.totalorder %s185_s25, %s402_s1 }
  0x35   :  { %p191_p9 = pnand %p189_p8, %p186_p7 }
  0x37   :  { %194 = shalt.err (!%p191_p9)
}
  0x38   :  { %67 = dma.vmem_to_hbm [thread:$0]  %s307_s6, 64, %s402_s1, [#allocation4], %s254_s18, %s254_s18, %s255_s19  }
  0x39   :  { %s195_s5 = scalar_lea.vmem %s313_s8, 64  ;;  %p200_p11 = scmp.lt.s32.totalorder %s313_s8, %s313_s8 }
  0x3a   :  { %p196_p10 = scmp.ne.s32.totalorder %s313_s8, %s195_s5  ;;  %p201_p12 = scmp.lt.s32.totalorder %s195_s5, %s195_s5 }
  0x3c   :  { %p202_p13 = por %p201_p12, %p200_p11 }
  0x3e   :  { %p203_p0 = pnand %p202_p13, %p196_p10 }
  0x40   :  { %206 = shalt.err (!%p203_p0)
}
  0x41   :  { %s207_s0 = scalar_lea.hbm %s404_s3, 64 }
  0x42   :  { %p208_p1 = scmp.ne.s32.totalorder %s404_s3, %s207_s0  ;;  %p211_p2 = scmp.lt.u32.totalorder %s207_s0, %s404_s3 }
  0x44   :  { %p213_p3 = pnand %p211_p2, %p208_p1 }
  0x46   :  { %216 = shalt.err (!%p213_p3)
}
  0x47   :  { %91 = dma.vmem_to_hbm [thread:$0]  %s313_s8, 64, %s404_s3, [#allocation7], %s254_s18, %s254_s18, %s255_s19  }
  0x48   :  { %s217_s15 = scalar_lea.vmem %s315_s10, 64  ;;  %p222_p5 = scmp.lt.s32.totalorder %s315_s10, %s315_s10 }
  0x49   :  { %p218_p4 = scmp.ne.s32.totalorder %s315_s10, %s217_s15  ;;  %p223_p6 = scmp.lt.s32.totalorder %s217_s15, %s217_s15 }
  0x4b   :  { %p224_p7 = por %p223_p6, %p222_p5 }
  0x4d   :  { %p225_p8 = pnand %p224_p7, %p218_p4 }
  0x4f   :  { %228 = shalt.err (!%p225_p8)
}
  0x50   :  { %s229_s20 = scalar_lea.hbm %s405_s4, 64 }
  0x51   :  { %p230_p9 = scmp.ne.s32.totalorder %s405_s4, %s229_s20  ;;  %p233_p10 = scmp.lt.u32.totalorder %s229_s20, %s405_s4 }
  0x53   :  { %p235_p11 = pnand %p233_p10, %p230_p9 }
  0x55   :  { %238 = shalt.err (!%p235_p11)
}
  0x56   :  { %103 = dma.vmem_to_hbm [thread:$0]  %s315_s10, 64, %s405_s4, [#allocation10], %s254_s18, %s254_s18, %s255_s19  }
  0x57   :  { %241 = dma.done.wait [#allocation4], 64  }
  0x58   :  { %242 = vsyncadd [#allocation4], 4294967232 }
  0x59   :  { %243 = dma.done.wait [#allocation7], 128  }
  0x5a   :  { %244 = vsyncadd [#allocation7], 4294967168 }
  0x5b   :  { %245 = dma.done.wait [#allocation10], 64  }
  0x5c   :  { %246 = vsyncadd [#allocation10], 4294967232 }
  0x5d   :  { %116 = vsyncpa [#allocation3], 1 }
  0x5e   :  { %117 = vsyncpa [#allocation4], 1 }
  0x5f   :  { %118 = vsyncpa [#allocation7], 1 }
  0x60   :  { %119 = vsyncpa [#allocation10], 1 }

</bundles_post_ra>
